<compile_context>
chip_gen: v7x
topology: tpu7x:2x2x1
jax: 0.10.0
libtpu: 0.0.40
codegen_flags: <defaults>
</compile_context>

<pallas_src>
import jax
import jax.numpy as jnp
from jax.experimental import pallas as pl
from jax.experimental.pallas import tpu as pltpu

IN_FEATURES = 28 * 28   # 784
NUM_CLASSES = 10
MAX_TM = 2048           # batch tile (rows per grid step); multiple of 16


def netlin_kernel(x_ref, w_ref, b_ref, o_ref):
    # x_ref: (TM, 784) bf16, w_ref: (784, 10) bf16, b_ref: (1, 10) f32
    # Hot path: MXU matmul with f32 accumulation + stable log_softmax (VPU/EUP).
    logits = jnp.dot(x_ref[...], w_ref[...],
                     preferred_element_type=jnp.float32) + b_ref[...]
    m = jnp.max(logits, axis=1, keepdims=True)
    shifted = logits - m
    lse = jnp.log(jnp.sum(jnp.exp(shifted), axis=1, keepdims=True))
    o_ref[...] = shifted - lse


def _pick_tm(B):
    # Small batches: one block covering the full batch (block == full array dim
    # satisfies the tiling rule). Large batches: 2048-row tiles (mult. of 16).
    if B <= MAX_TM:
        return B
    return MAX_TM


def netlin_forward(x_nchw, weight, bias):
    """x_nchw: (B, 1, 28, 28) float; weight: (10, 784); bias: (10,)."""
    B = x_nchw.shape[0]
    # Glue: flatten like torch's x.view(x.shape[0], -1); bf16 for the
    # bandwidth-dominant operands, f32 for bias / outputs.
    x_flat = x_nchw.reshape(B, -1).astype(jnp.bfloat16)            # (B, 784)
    w_t = weight.T.astype(jnp.bfloat16)                            # (784, 10)
    b2d = bias.reshape(1, NUM_CLASSES).astype(jnp.float32)         # (1, 10)

    tm = _pick_tm(B)
    grid = (pl.cdiv(B, tm),)

    x_bytes = B * IN_FEATURES * 2
    w_bytes = IN_FEATURES * NUM_CLASSES * 2
    o_bytes = B * NUM_CLASSES * 4
    cost = pl.CostEstimate(
        flops=2 * B * IN_FEATURES * NUM_CLASSES,
        bytes_accessed=x_bytes + w_bytes + o_bytes,
        transcendentals=B * NUM_CLASSES,
    )

    out = pl.pallas_call(
        netlin_kernel,
        out_shape=jax.ShapeDtypeStruct((B, NUM_CLASSES), jnp.float32),
        grid=grid,
        in_specs=[
            # x: tiled along batch; pipelined across grid steps.
            pl.BlockSpec((tm, IN_FEATURES), lambda i: (i, 0)),
            # weight/bias: constant index_map -> stays resident in VMEM.
            pl.BlockSpec((IN_FEATURES, NUM_CLASSES), lambda i: (0, 0)),
            pl.BlockSpec((1, NUM_CLASSES), lambda i: (0, 0)),
        ],
        out_specs=pl.BlockSpec((tm, NUM_CLASSES), lambda i: (i, 0)),
        compiler_params=pltpu.CompilerParams(
            dimension_semantics=("parallel",)),
        cost_estimate=cost,
    )(x_flat, w_t, b2d)
    return out


def init_params(key):
    # Deterministic init mimicking nn.Linear's uniform(-1/sqrt(fan_in), 1/sqrt(fan_in))
    kw, kb = jax.random.split(key)
    bound = 1.0 / jnp.sqrt(jnp.float32(IN_FEATURES))
    weight = jax.random.uniform(kw, (NUM_CLASSES, IN_FEATURES),
                                dtype=jnp.float32, minval=-bound, maxval=bound)
    bias = jax.random.uniform(kb, (NUM_CLASSES,),
                              dtype=jnp.float32, minval=-bound, maxval=bound)
    return weight, bias


if __name__ == "__main__":
    key = jax.random.PRNGKey(0)
    k_x, k_p = jax.random.split(key)

    B = 2
    x = jax.random.normal(k_x, (B, 1, 28, 28), dtype=jnp.float32)  # NCHW like PyTorch
    weight, bias = init_params(k_p)

    out = netlin_forward(x, weight, bias)
    out = jax.block_until_ready(out)
    assert out.shape == (B, NUM_CLASSES)

    # Reference 1: same bf16 matmul rounding as the kernel (tight tolerance).
    xb = x.reshape(B, -1).astype(jnp.bfloat16)
    wb = weight.T.astype(jnp.bfloat16)
    ref_logits = jnp.dot(xb, wb, preferred_element_type=jnp.float32) + bias
    ref = ref_logits - jax.scipy.special.logsumexp(ref_logits, axis=1, keepdims=True)
    assert jnp.allclose(out, ref, atol=1e-4), "mismatch vs bf16 reference"

    # Reference 2: full f32 reference (loose tolerance for bf16 input rounding).
    ref32_logits = x.reshape(B, -1) @ weight.T + bias
    ref32 = ref32_logits - jax.scipy.special.logsumexp(ref32_logits, axis=1,
                                                       keepdims=True)
    assert jnp.allclose(out, ref32, atol=2e-2), "mismatch vs f32 reference"

    print("KERNEL_OK")
</pallas_src>

<mosaic_0001>
module attributes {stable_mosaic.version = 11 : i64} {
  func.func @netlin_kernel(%arg0: i32, %arg1: memref<2x784xbf16, #tpu.memory_space<vmem>>, %arg2: memref<784x10xbf16, #tpu.memory_space<vmem>>, %arg3: memref<1x10xf32, #tpu.memory_space<vmem>>, %arg4: memref<2x10xf32, #tpu.memory_space<vmem>>) attributes {dimension_semantics = [#tpu.dimension_semantics<parallel>], iteration_bounds = array<i64: 1>, scalar_prefetch = 0 : i64, scratch_operands = 0 : i64, tpu.core_type = #tpu.core_type<tc>, window_params = [{transform_indices = @transform_0, window_bounds = array<i64: 2, 784>}, {pipeline_mode = #tpu.pipeline_mode<synchronous>, transform_indices = @transform_1, window_bounds = array<i64: 784, 10>}, {pipeline_mode = #tpu.pipeline_mode<synchronous>, transform_indices = @transform_2, window_bounds = array<i64: 1, 10>}, {transform_indices = @transform_3, window_bounds = array<i64: 2, 10>}]} {
    %c0 = arith.constant 0 : index
    %c0_0 = arith.constant 0 : index
    %0 = vector.load %arg1[%c0, %c0_0] : memref<2x784xbf16, #tpu.memory_space<vmem>>, vector<2x784xbf16>
    %c0_1 = arith.constant 0 : index
    %c0_2 = arith.constant 0 : index
    %1 = vector.load %arg2[%c0_1, %c0_2] : memref<784x10xbf16, #tpu.memory_space<vmem>>, vector<784x10xbf16>
    %cst = arith.constant dense<0.000000e+00> : vector<2x10xf32>
    %2 = tpu.matmul %0, %1, %cst {dimension_numbers = #tpu.dot_dimension_numbers<[1], [0], [0], [1], [0, 0, 1, 1], [], []>} : vector<2x784xbf16>, vector<784x10xbf16>, vector<2x10xf32> -> vector<2x10xf32>
    %c0_3 = arith.constant 0 : index
    %c0_4 = arith.constant 0 : index
    %3 = vector.load %arg3[%c0_3, %c0_4] : memref<1x10xf32, #tpu.memory_space<vmem>>, vector<1x10xf32>
    %4 = vector.broadcast %3 : vector<1x10xf32> to vector<2x10xf32>
    %5 = arith.addf %2, %4 : vector<2x10xf32>
    %cst_5 = arith.constant dense<0xFF800000> : vector<2xf32>
    %6 = vector.multi_reduction <maximumf>, %5, %cst_5 [1] : vector<2x10xf32> to vector<2xf32>
    %7 = vector.shape_cast %6 : vector<2xf32> to vector<2x1xf32>
    %8 = vector.broadcast %7 : vector<2x1xf32> to vector<2x10xf32>
    %9 = arith.subf %5, %8 : vector<2x10xf32>
    %10 = math.exp %9 : vector<2x10xf32>
    %cst_6 = arith.constant dense<0.000000e+00> : vector<2xf32>
    %11 = vector.multi_reduction <add>, %10, %cst_6 [1] : vector<2x10xf32> to vector<2xf32>
    %12 = vector.shape_cast %11 : vector<2xf32> to vector<2x1xf32>
    %13 = math.log %12 : vector<2x1xf32>
    %14 = vector.broadcast %13 : vector<2x1xf32> to vector<2x10xf32>
    %15 = arith.subf %9, %14 : vector<2x10xf32>
    %c0_7 = arith.constant 0 : index
    %c0_8 = arith.constant 0 : index
    %16 = vector.load %arg4[%c0_7, %c0_8] : memref<2x10xf32, #tpu.memory_space<vmem>>, vector<2x10xf32>
    tpu.vector_store %arg4[%c0_7, %c0_8], %15 {strides = array<i32>} : memref<2x10xf32, #tpu.memory_space<vmem>>, vector<2x10xf32>,
    return
  }
  func.func @transform_0(%arg0: i32) -> (i32, i32) {
    %c0_i32 = arith.constant 0 : i32
    %c0_i32_0 = arith.constant 0 : i32
    return %arg0, %c0_i32 : i32, i32
  }
  func.func @transform_1(%arg0: i32) -> (i32, i32) {
    %c0_i32 = arith.constant 0 : i32
    %c0_i32_0 = arith.constant 0 : i32
    %c0_i32_1 = arith.constant 0 : i32
    return %c0_i32, %c0_i32_0 : i32, i32
  }
  func.func @transform_2(%arg0: i32) -> (i32, i32) {
    %c0_i32 = arith.constant 0 : i32
    %c0_i32_0 = arith.constant 0 : i32
    %c0_i32_1 = arith.constant 0 : i32
    return %c0_i32, %c0_i32_0 : i32, i32
  }
  func.func @transform_3(%arg0: i32) -> (i32, i32) {
    %c0_i32 = arith.constant 0 : i32
    %c0_i32_0 = arith.constant 0 : i32
    return %arg0, %c0_i32 : i32, i32
  }
}

</mosaic_0001>

<bundles_post_ra>
// kernel: tpu_custom_call.1
= control target key start
LH: loop header
LB: loop body
LE: loop exit
PB: predicated region body
PF: predicated region fallthrough
CT: control target
= control target key end

     0   :  { %v127_v29 = vlaneseq  ;;  %v870_v33 = vmov 1966171168   ;;  %v871_v40 = vmov 0.0   ;;  %vm872_vm0 = vmmov 0   ;;  %s1062_s0 = inlined_call_operand.vmem [shape: bf16[2,784], index: 0, kind: input, shape index: {}]   ;;  %s1063_s1 = inlined_call_operand.vmem [shape: bf16[784,10], index: 1, kind: input, shape index: {}]   ;;  %s1064_s2 = inlined_call_operand.vmem [shape: f32[1,10], index: 2, kind: input, shape index: {}]   ;;  %s1065_s3 = inlined_call_operand.hbm [shape: f32[2,10], index: 3, kind: output, shape index: {}]  }
   0x1   :  { %v792_v0 = vld [vmem:[%s1063_s1 + $0x40] sm:$0xff]   ;;  %v796_v4 = vld [vmem:[%s1063_s1 + $0x48] sm:$0xff]   ;;  %v800_v8 = vld [vmem:[%s1063_s1 + $0x50] sm:$0xff]   ;;  %v125_v34 = vunpack.c.l.s4 %v870_v33 }
   0x2   :  { %v793_v1 = vld [vmem:[%s1063_s1] sm:$0xff]   ;;  %714 = vmatprep.subr.bf16.mxu0 %v792_v0  ;;  %v797_v5 = vld [vmem:[%s1063_s1 + $0x8] sm:$0xff]   ;;  %v801_v9 = vld [vmem:[%s1063_s1 + $0x10] sm:$0xff]   ;;  %v128_v35 = vshrl.u32 %v127_v29, 7 }
   0x3   :  { %v794_v2 = vld [vmem:[%s1063_s1 + $0xc0] sm:$0xff]   ;;  %715 = vmatpush3.bf16.msra.mxu0 %v793_v1  ;;  %v798_v6 = vld [vmem:[%s1063_s1 + $0xc8] sm:$0xff]   ;;  %v802_v10 = vld [vmem:[%s1063_s1 + $0xd0] sm:$0xff]   ;;  %v126_v39 = vunpack.c.0.s8 %v125_v34 }
   0x4   :  { %v795_v3 = vld [vmem:[%s1063_s1 + $0x80] sm:$0xff]   ;;  %736 = vmatprep.subr.bf16.mxu1 %v794_v2  ;;  %716 = vmatprep.subr.bf16.mxu0 %v796_v4  ;;  %v799_v7 = vld [vmem:[%s1063_s1 + $0x88] sm:$0xff]   ;;  %v803_v11 = vld [vmem:[%s1063_s1 + $0x90] sm:$0xff]  }
   0x5   :  { %737 = vmatpush3.bf16.msra.mxu1 %v795_v3  ;;  %v804_v12 = vld [vmem:[%s1063_s1 + $0x58] sm:$0xff]   ;;  %v808_v16 = vld [vmem:[%s1063_s1 + $0x60] sm:$0xff]   ;;  %v812_v20 = vld [vmem:[%s1063_s1 + $0x68] sm:$0xff]   ;;  %v129_v41 = vsub.s32 %v126_v39, %v128_v35 }
   0x6   :  { %738 = vmatprep.subr.bf16.mxu1 %v798_v6  ;;  %v805_v13 = vld [vmem:[%s1063_s1 + $0x18] sm:$0xff]   ;;  %v809_v17 = vld [vmem:[%s1063_s1 + $0x20] sm:$0xff]   ;;  %v813_v21 = vld [vmem:[%s1063_s1 + $0x28] sm:$0xff]  }
   0x7   :  { %717 = vmatpush3.bf16.msra.mxu0 %v797_v5  ;;  %v806_v14 = vld [vmem:[%s1063_s1 + $0xd8] sm:$0xff]   ;;  %v810_v18 = vld [vmem:[%s1063_s1 + $0xe0] sm:$0xff]   ;;  %v814_v22 = vld [vmem:[%s1063_s1 + $0xe8] sm:$0xff]  }
   0x8   :  { %718 = vmatprep.subr.bf16.mxu0 %v800_v8  ;;  %v807_v15 = vld [vmem:[%s1063_s1 + $0x98] sm:$0xff]   ;;  %v811_v19 = vld [vmem:[%s1063_s1 + $0xa0] sm:$0xff]   ;;  %v815_v23 = vld [vmem:[%s1063_s1 + $0xa8] sm:$0xff]  }
   0x9   :  { %739 = vmatpush3.bf16.msra.mxu1 %v799_v7  ;;  %v816_v24 = vld [vmem:[%s1063_s1 + $0x70] sm:$0xff]   ;;  %v820_v28 = vld [vmem:[%s1063_s1 + $0x78] sm:$0xff]   ;;  %v16_v32 = vld [vmem:[%s1062_s0] sm:$0x7f] }
   0xa   :  { %740 = vmatprep.subr.bf16.mxu1 %v802_v10  ;;  %v817_v25 = vld [vmem:[%s1063_s1 + $0x30] sm:$0xff]   ;;  %v821_v30 = vld [vmem:[%s1063_s1 + $0x38] sm:$0xff]   ;;  %v825_v37 = vld [vmem:[%s1063_s1 + $0x140] sm:$0xff]   ;;  %v123_v38 = vcombine.high %v16_v32, %v16_v32  ;;  %v130_v42 = vrot.slane %v16_v32, %v129_v41 }
   0xb   :  { %719 = vmatpush3.bf16.msra.mxu0 %v801_v9  ;;  %v818_v26 = vld [vmem:[%s1063_s1 + $0xf0] sm:$0xff]   ;;  %v822_v31 = vld [vmem:[%s1063_s1 + $0xf8] sm:$0xff]   ;;  %v826_v48 = vld [vmem:[%s1063_s1 + $0x100] sm:$0xff]  }
   0xc   :  { %720 = vmatprep.subr.bf16.mxu0 %v804_v12  ;;  %v819_v27 = vld [vmem:[%s1063_s1 + $0xb0] sm:$0xff]   ;;  %v824_v36 = vld [vmem:[%s1063_s1 + $0xb8] sm:$0xff]   ;;  %v137_v43 = vrot.slane %v123_v38, %v129_v41  ;;  %v138_v44 = vcombine.high %v130_v42, %v130_v42  ;;  %v146_v45 = vrot.slane %v130_v42, %v129_v41  ;;  %v827_v50 = vld [vmem:[%s1063_s1 + $0x148] sm:$0xff]  }
   0xd   :  { %741 = vmatpush3.bf16.msra.mxu1 %v803_v11  ;;  %v828_v53 = vld [vmem:[%s1063_s1 + $0x108] sm:$0xff]   ;;  %v829_v54 = vld [vmem:[%s1063_s1 + $0x150] sm:$0xff]   ;;  %v841_v56 = vld [vmem:[%s1063_s1 + $0x180] sm:$0xff]  }
   0xe   :  { %742 = vmatprep.subr.bf16.mxu1 %v806_v14  ;;  %v139_v46 = vcombine.high %v137_v43, %v137_v43  ;;  %v160_v47 = vrot.slane %v138_v44, %v129_v41  ;;  %v168_v49 = vcombine.high %v146_v45, %v146_v45  ;;  %v153_v55 = vrot.slane %v137_v43, %v129_v41 }
   0xf   :  { %721 = vmatpush3.bf16.msra.mxu0 %v805_v13 }
  0x10   :  { %722 = vmatprep.subr.bf16.mxu0 %v808_v16  ;;  %507 = vmatprep.mubr.bf16.mxu0 %v160_v47  ;;  %v170_v51 = vcombine.high %v160_v47, %v160_v47  ;;  %v167_v52 = vrot.slane %v139_v46, %v129_v41 }
  0x11   :  { %743 = vmatpush3.bf16.msra.mxu1 %v807_v15 }
  0x12   :  { %744 = vmatprep.subr.bf16.mxu1 %v810_v18  ;;  %547 = vmatprep.mubr.bf16.mxu1 %v170_v51 }
  0x13   :  { %723 = vmatpush3.bf16.msra.mxu0 %v809_v17 }
  0x14   :  { %724 = vmatprep.subr.bf16.mxu0 %v812_v20 }
  0x15   :  { %745 = vmatpush3.bf16.msra.mxu1 %v811_v19 }
  0x16   :  { %746 = vmatprep.subr.bf16.mxu1 %v814_v22 }
  0x17   :  { %725 = vmatpush3.bf16.msra.mxu0 %v813_v21 }
  0x18   :  { %726 = vmatprep.subr.bf16.mxu0 %v816_v24 }
  0x19   :  { %747 = vmatpush3.bf16.msra.mxu1 %v815_v23 }
  0x1a   :  { %748 = vmatprep.subr.bf16.mxu1 %v818_v26 }
  0x1b   :  { %727 = vmatpush3.bf16.msra.mxu0 %v817_v25 }
  0x1c   :  { %728 = vmatprep.subr.bf16.mxu0 %v820_v28 }
  0x1d   :  { %749 = vmatpush3.bf16.msra.mxu1 %v819_v27 }
  0x1e   :  { %750 = vmatprep.subr.bf16.mxu1 %v822_v31 }
  0x1f   :  { %729 = vmatpush3.bf16.msra.mxu0 %v821_v30 }
  0x20   :  { %758 = vmatprep.subr.bf16.mxu0 %v825_v37 }
  0x21   :  { %751 = vmatpush3.bf16.msra.mxu1 %v824_v36 }
  0x22   :  { %782 = vmatprep.subr.bf16.mxu1 %v871_v40  ;;  %508 = vmatmul.mubr.bf16.vlgmr.msra.gmra.mrb[0].mxu0 %v146_v45 }
  0x23   :  { %759 = vmatpush3.bf16.msra.mxu0 %v826_v48  ;;  %587 = vmatprep.mubr.bf16.mxu0 %v167_v52 }
  0x24   :  { %548 = vmatmul.mubr.bf16.vlgmr.msra.gmra.mrb[0].mxu1 %v168_v49  ;;  %760 = vmatprep.subr.bf16.mxu0 %v827_v50 }
  0x25   :  { %784 = vmatprep.mubr.msk.bf16.mxu1 %vm872_vm0, %v871_v40 }
  0x26   :  { %8 = vsyncpa [#allocation3], 0  ;;  %v830_v57 = vld [vmem:[%s1063_s1 + $0x110] sm:$0xff]   ;;  %v831_v58 = vld [vmem:[%s1063_s1 + $0x158] sm:$0xff]   ;;  %783 = vmatpush3.bf16.msra.mxu1 %v841_v56  ;;  %v169_v59 = vcombine.high %v153_v55, %v153_v55  ;;  %vm471_vm1 = vcmask 130048   ;;  %vm635_vm2 = vcmask 74752  }
  0x27   :  { %761 = vmatpush3.bf16.msra.mxu0 %v828_v53  ;;  %v832_v60 = vld [vmem:[%s1063_s1 + $0x118] sm:$0xff]   ;;  %v833_v61 = vld [vmem:[%s1063_s1 + $0x160] sm:$0xff]   ;;  %v835_v63 = vld [vmem:[%s1063_s1 + $0x168] sm:$0xff]  }
  0x28   :  { %762 = vmatprep.subr.bf16.mxu0 %v829_v54  ;;  %v834_v62 = vld [vmem:[%s1063_s1 + $0x120] sm:$0xff]   ;;  %v836_v0 = vld [vmem:[%s1063_s1 + $0x128] sm:$0xff]   ;;  %v837_v1 = vld [vmem:[%s1063_s1 + $0x170] sm:$0xff]  }
  0x29   :  { %v838_v2 = vld [vmem:[%s1063_s1 + $0x130] sm:$0xff]   ;;  %v839_v3 = vld [vmem:[%s1063_s1 + $0x178] sm:$0xff]   ;;  %v663_v6 = vld [vmem:[%s1064_s2] ss:$0 sm:$0xff] }
  0x2a   :  { %v840_v4 = vld [vmem:[%s1063_s1 + $0x138] sm:$0xff]   ;;  %s873_s1 = smov [#allocation2]  }
  0x2b   :  { %763 = vmatpush3.bf16.msra.mxu0 %v830_v57  ;;  %s655_s2 = sshll.u32 %s873_s1, 4  ;;  %s656_s2 = int_to_ptr.vmem [resolvable:$true] %s655_s2 }
  0x2c   :  { %764 = vmatprep.subr.bf16.mxu0 %v831_v58  ;;  %785 = vmatmul.mubr.msk.bf16.vlgmr.msra.gmra.mrb[4].mxu1 %vm471_vm1, %v169_v59  ;;  %s846_s4 = scalar_lea.vmem %s656_s2, 32  ;;  %p851_p1 = scmp.lt.s32.totalorder %s656_s2, %s656_s2 }
  0x2d   :  { %p847_p0 = scmp.ne.s32.totalorder %s656_s2, %s846_s4  ;;  %p852_p2 = scmp.lt.s32.totalorder %s846_s4, %s846_s4 }
  0x2f   :  { %765 = vmatpush3.bf16.msra.mxu0 %v832_v60  ;;  %p853_p3 = por %p852_p2, %p851_p1 }
  0x30   :  { %766 = vmatprep.subr.bf16.mxu0 %v833_v61 }
  0x31   :  { %p854_p4 = pnand %p853_p3, %p847_p0 }
  0x33   :  { %767 = vmatpush3.bf16.msra.mxu0 %v834_v62 }
  0x34   :  { %768 = vmatprep.subr.bf16.mxu0 %v835_v63 }
  0x37   :  { %769 = vmatpush3.bf16.msra.mxu0 %v836_v0 }
  0x38   :  { %770 = vmatprep.subr.bf16.mxu0 %v837_v1 }
  0x3b   :  { %771 = vmatpush3.bf16.msra.mxu0 %v838_v2 }
  0x3c   :  { %772 = vmatprep.subr.bf16.mxu0 %v839_v3 }
  0x3f   :  { %773 = vmatpush3.bf16.msra.mxu0 %v840_v4 }
  0x42   :  { %588 = vmatmul.mubr.bf16.vlgmr.msra.gmra.mrb[4].mxu0 %v153_v55 }
  0xf5   :  { %v730_v5 = vpop.f32.mrb[0].mxu0 }
  0xf6   :  { %v731_v7 = vpop.f32.mrb[1].mxu0 }
  0xf7   :  { %v732_v8 = vadd.f32 %v731_v7, %v730_v5  ;;  %v733_v9 = vpop.f32.mrb[2].mxu0  ;;  %v752_v10 = vpop.f32.mrb[0].mxu1 }
  0xf8   :  { %v734_v11 = vpop.f32.mrb[3].mxu0  ;;  %v753_v12 = vpop.f32.mrb[1].mxu1 }
  0xf9   :  { %v510_v13 = vadd.f32 %v732_v8, %v663_v6  ;;  %v754_v14 = vadd.f32 %v753_v12, %v752_v10  ;;  %v755_v15 = vpop.f32.mrb[2].mxu1 }
  0xfa   :  { %v756_v16 = vpop.f32.mrb[3].mxu1 }
  0xfb   :  { %v550_v17 = vadd.f32 %v754_v14, %v510_v13 }
  0xff   :  { %v629_v18 = vpop.f32.mrb[4].mxu1 }
 0x100   :  { %v786_v19 = vpop.f32.mrb[5].mxu1 }
 0x101   :  { %v632_v20 = vpop.f32.mrb[6].mxu1 }
 0x102   :  { %v787_v21 = vpop.f32.mrb[7].mxu1 }
 0x115   :  { %v774_v22 = vpop.f32.mrb[4].mxu0 }
 0x116   :  { %v775_v23 = vpop.f32.mrb[5].mxu0 }
 0x117   :  { %v776_v24 = vadd.f32 %v775_v23, %v774_v22  ;;  %v777_v25 = vpop.f32.mrb[6].mxu0 }
 0x118   :  { %v778_v26 = vpop.f32.mrb[7].mxu0 }
 0x119   :  { %v590_v27 = vadd.f32 %v776_v24, %v550_v17 }
 0x11b   :  { %v630_v28 = vadd.f32 %v629_v18, %v590_v27 }
 0x11d   :  { %v636_v29 = vsel %vm635_vm2, %v630_v28, -inf }
 0x11e   :  { %637 = vmax.xlane.f32.xlu0 %v636_v29 }
 0x1ab   :  { %v638_v30 = vpop.xlane.xlu0 %637 }
 0x1ac   :  { %v639_v31 = vsub.f32 %v630_v28, %v638_v30 }
 0x1ae   :  { %v640_v32 = vmul.f32 1.442695, %v639_v31 }
 0x1b0   :  { %842 = vpow2.f32 %v640_v32 }
 0x1ba   :  { %v843_v33 = vpop.eup %842 }
 0x1bb   :  { %v642_v34 = vsel %vm635_vm2, %v843_v33, 0.0 }
 0x1bc   :  { %643 = vadd.xlane.f32.xlu0 %v642_v34 }
 0x249   :  { %v644_v35 = vpop.xlane.xlu0 %643 }
 0x24a   :  { %844 = vlog2.f32 %v644_v35 }
 0x254   :  { %v845_v36 = vpop.eup %844 }
 0x255   :  { %v646_v37 = vmul.f32 0.6931472, %v845_v36 }
 0x257   :  { %v647_v38 = vsub.f32 %v639_v31, %v646_v37 }
 0x259   :  { %648 = vst.msk [vmem:[#allocation2] sm:$0x3] %vm635_vm2, %v647_v38 }
 0x25a   :  { %857 = shalt.err (!%p854_p4)
}
 0x25b   :  { %s858_s7 = scalar_lea.hbm %s1065_s3, 32 }
 0x25c   :  { %p859_p5 = scmp.ne.s32.totalorder %s1065_s3, %s858_s7  ;;  %p862_p6 = scmp.lt.u32.totalorder %s858_s7, %s1065_s3 }
 0x25e   :  { %p864_p7 = pnand %p862_p6, %p859_p5 }
 0x260   :  { %867 = shalt.err (!%p864_p7)
}
 0x261   :  { %658 = dma.vmem_to_hbm [thread:$0]  %s656_s2, 32, %s1065_s3, [#allocation3]  }
 0x262   :  { %868 = dma.done.wait [#allocation3], 32  }
 0x263   :  { %869 = vsyncadd [#allocation3], 4294967264 }
 0x264   :  { %662 = vsyncpa [#allocation3], 1 }

</bundles_post_ra>
